<compile_context>
chip_gen: v7x
topology: tpu7x:2x2x1
jax: 0.10.0
libtpu: 0.0.40
codegen_flags: <defaults>
</compile_context>

<pallas_src>
import jax
import jax.numpy as jnp
from jax.experimental import pallas as pl
from jax.experimental.pallas import tpu as pltpu


# ----------------------------- kernel ---------------------------------------


def disc_kernel(x_ref, w1_ref, b1_ref, w2_ref, b2_ref, w3_ref, b3_ref, o_ref):
    # x tile: (bt, F) bf16
    x = x_ref[...]

    # fc1 (BN folded into W1/b1) + LeakyReLU(0.2)   -- f32 accumulate/epilogue
    h = jnp.dot(x, w1_ref[...], preferred_element_type=jnp.float32) + b1_ref[...]
    h = jnp.maximum(h, 0.2 * h)

    # fc2 (BN folded into W2/b2) + LeakyReLU(0.2)
    h = jnp.dot(h.astype(jnp.bfloat16), w2_ref[...],
                preferred_element_type=jnp.float32) + b2_ref[...]
    h = jnp.maximum(h, 0.2 * h)

    # Dropout(0.5): identity in eval mode.

    # fc3: (bt,128)x(128,1) -> VPU multiply + lane reduction (MXU N=1 is wasteful)
    z = jnp.sum(h * w3_ref[...], axis=-1, keepdims=True) + b3_ref[...]

    # Sigmoid.  Exact 1/(1+exp(-z)) on a (bt,1) vector is negligible and keeps
    # the output strictly inside [0, 1] (approx reciprocal could overshoot 1).
    o_ref[...] = (1.0 / (1.0 + jnp.exp(-z))).astype(o_ref.dtype)


# ----------------------------- wrapper ---------------------------------------


def discriminator_forward(x, params, *, bt=128):
    """x: (B, input_dim) float32. params: folded/cast params from prepare_params.
    Returns (B, 1) float32 in [0, 1]."""
    w1, b1, w2, b2, w3, b3 = params
    B, F = x.shape

    num_tiles = pl.cdiv(B, bt)
    Bp = num_tiles * bt

    xb = x.astype(jnp.bfloat16)
    if Bp != B:
        # masked tail: pad to a full tile, slice the valid rows afterwards
        xb = jnp.pad(xb, ((0, Bp - B), (0, 0)))

    full = lambda shape: pl.BlockSpec(shape, lambda i: (0, 0))

    in_specs = [
        pl.BlockSpec((bt, F), lambda i: (i, 0)),   # x: tiled over batch
        full(w1.shape), full(b1.shape),            # fc1 (BN folded)
        full(w2.shape), full(b2.shape),            # fc2 (BN folded)
        full(w3.shape), full(b3.shape),            # fc3 row + bias
    ]
    out_specs = pl.BlockSpec((bt, 1), lambda i: (i, 0))

    out = pl.pallas_call(
        disc_kernel,
        grid=(num_tiles,),
        in_specs=in_specs,
        out_specs=out_specs,
        out_shape=jax.ShapeDtypeStruct((Bp, 1), jnp.float32),
        compiler_params=pltpu.CompilerParams(
            dimension_semantics=("parallel",)),
    )(xb, w1, b1, w2, b2, w3, b3)

    return out[:B]


# ----------------------------- params ----------------------------------------


def _fold_linear_bn(w, b, gamma, beta, mean, var, eps=1e-5):
    """Fold eval-mode BatchNorm into the preceding Linear:
    BN(xW + b) = x(W*s) + (b*s + t), s = gamma/sqrt(var+eps), t = beta - mean*s."""
    s = gamma / jnp.sqrt(var + eps)
    t = beta - mean * s
    return w * s[None, :], b * s + t


def init_params(key, input_dim):
    """Matches initialize_weights(): Linear weight ~ N(0, 0.02), bias = 0.
    BatchNorm at init: gamma=1, beta=0, running_mean=0, running_var=1, eps=1e-5."""
    k1, k2, k3 = jax.random.split(key, 3)

    w1 = 0.02 * jax.random.normal(k1, (input_dim, 256), jnp.float32)
    b1 = jnp.zeros((256,), jnp.float32)
    g1, be1 = jnp.ones((256,), jnp.float32), jnp.zeros((256,), jnp.float32)
    m1, v1 = jnp.zeros((256,), jnp.float32), jnp.ones((256,), jnp.float32)

    w2 = 0.02 * jax.random.normal(k2, (256, 128), jnp.float32)
    b2 = jnp.zeros((128,), jnp.float32)
    g2, be2 = jnp.ones((128,), jnp.float32), jnp.zeros((128,), jnp.float32)
    m2, v2 = jnp.zeros((128,), jnp.float32), jnp.ones((128,), jnp.float32)

    w3 = 0.02 * jax.random.normal(k3, (128, 1), jnp.float32)
    b3 = jnp.zeros((1,), jnp.float32)

    return (w1, b1, g1, be1, m1, v1,
            w2, b2, g2, be2, m2, v2,
            w3, b3)


def prepare_params(raw, eps=1e-5):
    """Fold BN into weights (offline) and cast matmul operands to bf16."""
    (w1, b1, g1, be1, m1, v1,
     w2, b2, g2, be2, m2, v2,
     w3, b3) = raw

    w1f, b1f = _fold_linear_bn(w1, b1, g1, be1, m1, v1, eps)
    w2f, b2f = _fold_linear_bn(w2, b2, g2, be2, m2, v2, eps)

    return (
        w1f.astype(jnp.bfloat16), b1f.reshape(1, -1).astype(jnp.float32),
        w2f.astype(jnp.bfloat16), b2f.reshape(1, -1).astype(jnp.float32),
        w3.reshape(1, -1).astype(jnp.float32),   # (1, 128) row for VPU reduce
        b3.reshape(1, 1).astype(jnp.float32),
    )


# --------------------------- reference (pure JAX) -----------------------------


def discriminator_ref(x, raw, eps=1e-5):
    (w1, b1, g1, be1, m1, v1,
     w2, b2, g2, be2, m2, v2,
     w3, b3) = raw

    def bn(h, g, be, m, v):
        return (h - m) / jnp.sqrt(v + eps) * g + be

    h = x @ w1 + b1
    h = bn(h, g1, be1, m1, v1)
    h = jnp.where(h > 0, h, 0.2 * h)
    h = h @ w2 + b2
    h = bn(h, g2, be2, m2, v2)
    h = jnp.where(h > 0, h, 0.2 * h)
    z = h @ w3 + b3
    return 1.0 / (1.0 + jnp.exp(-z))


# ------------------------------- main -----------------------------------------


if __name__ == "__main__":
    key = jax.random.PRNGKey(0)
    kx, kp = jax.random.split(key)

    B, INPUT_DIM = 250, 32          # B not a multiple of bt -> exercises tail padding
    x = jax.random.normal(kx, (B, INPUT_DIM), jnp.float32)

    raw = init_params(kp, INPUT_DIM)
    params = prepare_params(raw)

    out = discriminator_forward(x, params, bt=128)   # grid = 2 tiles
    out = jax.block_until_ready(out)

    assert out.shape == (B, 1)
    assert bool(jnp.all(jnp.isfinite(out)))
    assert bool(jnp.all((out >= 0.0) & (out <= 1.0)))

    ref = discriminator_ref(x, raw)
    assert bool(jnp.allclose(out, ref, atol=1e-2)), "mismatch vs f32 reference"

    print("KERNEL_OK")
</pallas_src>

<mosaic_0001>
module attributes {stable_mosaic.version = 11 : i64} {
  func.func @disc_kernel(%arg0: i32, %arg1: memref<128x32xbf16, #tpu.memory_space<vmem>>, %arg2: memref<32x256xbf16, #tpu.memory_space<vmem>>, %arg3: memref<1x256xf32, #tpu.memory_space<vmem>>, %arg4: memref<256x128xbf16, #tpu.memory_space<vmem>>, %arg5: memref<1x128xf32, #tpu.memory_space<vmem>>, %arg6: memref<1x128xf32, #tpu.memory_space<vmem>>, %arg7: memref<1x1xf32, #tpu.memory_space<vmem>>, %arg8: memref<128x1xf32, #tpu.memory_space<vmem>>) attributes {dimension_semantics = [#tpu.dimension_semantics<parallel>], iteration_bounds = array<i64: 2>, scalar_prefetch = 0 : i64, scratch_operands = 0 : i64, tpu.core_type = #tpu.core_type<tc>, window_params = [{transform_indices = @transform_0, window_bounds = array<i64: 128, 32>}, {pipeline_mode = #tpu.pipeline_mode<synchronous>, transform_indices = @transform_1, window_bounds = array<i64: 32, 256>}, {pipeline_mode = #tpu.pipeline_mode<synchronous>, transform_indices = @transform_2, window_bounds = array<i64: 1, 256>}, {pipeline_mode = #tpu.pipeline_mode<synchronous>, transform_indices = @transform_3, window_bounds = array<i64: 256, 128>}, {pipeline_mode = #tpu.pipeline_mode<synchronous>, transform_indices = @transform_4, window_bounds = array<i64: 1, 128>}, {pipeline_mode = #tpu.pipeline_mode<synchronous>, transform_indices = @transform_5, window_bounds = array<i64: 1, 128>}, {pipeline_mode = #tpu.pipeline_mode<synchronous>, transform_indices = @transform_6, window_bounds = array<i64: 1, 1>}, {transform_indices = @transform_7, window_bounds = array<i64: 128, 1>}]} {
    %c0 = arith.constant 0 : index
    %c0_0 = arith.constant 0 : index
    %0 = vector.load %arg1[%c0, %c0_0] : memref<128x32xbf16, #tpu.memory_space<vmem>>, vector<128x32xbf16>
    %c0_1 = arith.constant 0 : index
    %c0_2 = arith.constant 0 : index
    %1 = vector.load %arg2[%c0_1, %c0_2] : memref<32x256xbf16, #tpu.memory_space<vmem>>, vector<32x256xbf16>
    %cst = arith.constant dense<0.000000e+00> : vector<128x256xf32>
    %2 = tpu.matmul %0, %1, %cst {dimension_numbers = #tpu.dot_dimension_numbers<[1], [0], [0], [1], [0, 0, 1, 1], [], []>} : vector<128x32xbf16>, vector<32x256xbf16>, vector<128x256xf32> -> vector<128x256xf32>
    %c0_3 = arith.constant 0 : index
    %c0_4 = arith.constant 0 : index
    %3 = vector.load %arg3[%c0_3, %c0_4] : memref<1x256xf32, #tpu.memory_space<vmem>>, vector<1x256xf32>
    %4 = vector.broadcast %3 : vector<1x256xf32> to vector<128x256xf32>
    %5 = arith.addf %2, %4 : vector<128x256xf32>
    %cst_5 = arith.constant 2.000000e-01 : f32
    %6 = vector.broadcast %cst_5 : f32 to vector<128x256xf32>
    %7 = arith.mulf %6, %5 : vector<128x256xf32>
    %8 = arith.maximumf %5, %7 : vector<128x256xf32>
    %9 = arith.truncf %8 : vector<128x256xf32> to vector<128x256xbf16>
    %c0_6 = arith.constant 0 : index
    %c0_7 = arith.constant 0 : index
    %10 = vector.load %arg4[%c0_6, %c0_7] : memref<256x128xbf16, #tpu.memory_space<vmem>>, vector<256x128xbf16>
    %cst_8 = arith.constant dense<0.000000e+00> : vector<128x128xf32>
    %11 = tpu.matmul %9, %10, %cst_8 {dimension_numbers = #tpu.dot_dimension_numbers<[1], [0], [0], [1], [0, 0, 1, 1], [], []>} : vector<128x256xbf16>, vector<256x128xbf16>, vector<128x128xf32> -> vector<128x128xf32>
    %c0_9 = arith.constant 0 : index
    %c0_10 = arith.constant 0 : index
    %12 = vector.load %arg5[%c0_9, %c0_10] : memref<1x128xf32, #tpu.memory_space<vmem>>, vector<1x128xf32>
    %13 = vector.broadcast %12 : vector<1x128xf32> to vector<128x128xf32>
    %14 = arith.addf %11, %13 : vector<128x128xf32>
    %cst_11 = arith.constant 2.000000e-01 : f32
    %15 = vector.broadcast %cst_11 : f32 to vector<128x128xf32>
    %16 = arith.mulf %15, %14 : vector<128x128xf32>
    %17 = arith.maximumf %14, %16 : vector<128x128xf32>
    %c0_12 = arith.constant 0 : index
    %c0_13 = arith.constant 0 : index
    %18 = vector.load %arg6[%c0_12, %c0_13] : memref<1x128xf32, #tpu.memory_space<vmem>>, vector<1x128xf32>
    %19 = vector.broadcast %18 : vector<1x128xf32> to vector<128x128xf32>
    %20 = arith.mulf %17, %19 : vector<128x128xf32>
    %cst_14 = arith.constant dense<0.000000e+00> : vector<128xf32>
    %21 = vector.multi_reduction <add>, %20, %cst_14 [1] : vector<128x128xf32> to vector<128xf32>
    %22 = vector.shape_cast %21 : vector<128xf32> to vector<128x1xf32>
    %c0_15 = arith.constant 0 : index
    %c0_16 = arith.constant 0 : index
    %23 = vector.load %arg7[%c0_15, %c0_16] : memref<1x1xf32, #tpu.memory_space<vmem>>, vector<1x1xf32>
    %24 = vector.broadcast %23 : vector<1x1xf32> to vector<128x1xf32>
    %25 = arith.addf %22, %24 : vector<128x1xf32>
    %cst_17 = arith.constant 0.000000e+00 : f32
    %26 = vector.broadcast %cst_17 : f32 to vector<128x1xf32>
    %27 = arith.subf %26, %25 : vector<128x1xf32>
    %28 = math.exp %27 : vector<128x1xf32>
    %cst_18 = arith.constant 1.000000e+00 : f32
    %29 = vector.broadcast %cst_18 : f32 to vector<128x1xf32>
    %30 = arith.addf %29, %28 : vector<128x1xf32>
    %cst_19 = arith.constant 1.000000e+00 : f32
    %31 = vector.broadcast %cst_19 : f32 to vector<128x1xf32>
    %32 = arith.divf %31, %30 : vector<128x1xf32>
    %c0_20 = arith.constant 0 : index
    %c0_21 = arith.constant 0 : index
    %33 = vector.load %arg8[%c0_20, %c0_21] : memref<128x1xf32, #tpu.memory_space<vmem>>, vector<128x1xf32>
    tpu.vector_store %arg8[%c0_20, %c0_21], %32 {strides = array<i32>} : memref<128x1xf32, #tpu.memory_space<vmem>>, vector<128x1xf32>,
    return
  }
  func.func @transform_0(%arg0: i32) -> (i32, i32) {
    %c0_i32 = arith.constant 0 : i32
    %c0_i32_0 = arith.constant 0 : i32
    return %arg0, %c0_i32 : i32, i32
  }
  func.func @transform_1(%arg0: i32) -> (i32, i32) {
    %c0_i32 = arith.constant 0 : i32
    %c0_i32_0 = arith.constant 0 : i32
    %c0_i32_1 = arith.constant 0 : i32
    return %c0_i32, %c0_i32_0 : i32, i32
  }
  func.func @transform_2(%arg0: i32) -> (i32, i32) {
    %c0_i32 = arith.constant 0 : i32
    %c0_i32_0 = arith.constant 0 : i32
    %c0_i32_1 = arith.constant 0 : i32
    return %c0_i32, %c0_i32_0 : i32, i32
  }
  func.func @transform_3(%arg0: i32) -> (i32, i32) {
    %c0_i32 = arith.constant 0 : i32
    %c0_i32_0 = arith.constant 0 : i32
    %c0_i32_1 = arith.constant 0 : i32
    return %c0_i32, %c0_i32_0 : i32, i32
  }
  func.func @transform_4(%arg0: i32) -> (i32, i32) {
    %c0_i32 = arith.constant 0 : i32
    %c0_i32_0 = arith.constant 0 : i32
    %c0_i32_1 = arith.constant 0 : i32
    return %c0_i32, %c0_i32_0 : i32, i32
  }
  func.func @transform_5(%arg0: i32) -> (i32, i32) {
    %c0_i32 = arith.constant 0 : i32
    %c0_i32_0 = arith.constant 0 : i32
    %c0_i32_1 = arith.constant 0 : i32
    return %c0_i32, %c0_i32_0 : i32, i32
  }
  func.func @transform_6(%arg0: i32) -> (i32, i32) {
    %c0_i32 = arith.constant 0 : i32
    %c0_i32_0 = arith.constant 0 : i32
    %c0_i32_1 = arith.constant 0 : i32
    return %c0_i32, %c0_i32_0 : i32, i32
  }
  func.func @transform_7(%arg0: i32) -> (i32, i32) {
    %c0_i32 = arith.constant 0 : i32
    %c0_i32_0 = arith.constant 0 : i32
    return %arg0, %c0_i32 : i32, i32
  }
}

</mosaic_0001>

<bundles_post_ra>
// kernel: tpu_custom_call.1
= control target key start
LH: loop header
LB: loop body
LE: loop exit
PB: predicated region body
PF: predicated region fallthrough
CT: control target
= control target key end

     0   :  { %s1391_s26 = smov 0   ;;  %s1631_s0 = inlined_call_operand.vmem [shape: bf16[256,32], index: 0, kind: input, shape index: {}]   ;;  %s1632_s1 = inlined_call_operand.vmem [shape: bf16[32,256], index: 1, kind: input, shape index: {}]   ;;  %s1633_s2 = inlined_call_operand.vmem [shape: f32[1,256], index: 2, kind: input, shape index: {}]   ;;  %s1634_s3 = inlined_call_operand.vmem [shape: bf16[256,128], index: 3, kind: input, shape index: {}]   ;;  %s1635_s4 = inlined_call_operand.vmem [shape: f32[1,128], index: 4, kind: input, shape index: {}]   ;;  %s1636_s5 = inlined_call_operand.vmem [shape: f32[1,128], index: 5, kind: input, shape index: {}]   ;;  %s1637_s6 = inlined_call_operand.<no memory space> [shape: f32[1,1], index: 6, kind: input, shape index: {}]   ;;  %s1638_s7 = inlined_call_operand.vmem [shape: f32[256,1], index: 7, kind: output, shape index: {}]  }
   0x1   :  { %v12_v0 = vstv %s1637_s6 }
   0x2   :  { %13 = vst [vmem:[#allocation2] sm:$0x1] %v12_v0 }
   0x3 LB: > { %s1106_s27 = sadd.s32 4294967295, %s1345_s26   ;;  %p1110_p0 = scmp.ge.s32.totalorder %s1345_s26, 1  ;;  %s1345_s26 = sphi %s1391_s26, %s19_s26  }
   0x4   : > { %p240_p1 = scmp.lt.s32.totalorder %s1345_s26, 3 }
   0x6   : > { %p241_p2 = pnand %p1110_p0, %p240_p1 }
   0x7   : > { %v1245_v1 = vld [vmem:[%s1632_s1 + $0x4] ss:$8 sps:$4 sm:$0xff] (!%p241_p2)   ;;  %s1111_s6 = sshll.u32 (!%p241_p2), %s1106_s27, 4  ;;  %v1247_v2 = vld [vmem:[%s1632_s1] ss:$8 sps:$4 sm:$0xff] (!%p241_p2)   ;;  %v1347_v3 = vmov (!%p241_p2), 0   ;;  %v307_v30 = vlaneseq (!%p241_p2) }
   0x8   : > { %244 = sbr.rel (%p241_p2) target bundleno = 697 (0x2b9), region = 48  ;;  %434 = vmatprep.mubr.bf16.mxu0 (!%p241_p2), %v1347_v3  ;;  %p273_p3 = scmp.lt.s32.totalorder (!%p241_p2), %s1111_s6, 31  ;;  %402 = vmatprep.subr.bf16.mxu0 (!%p241_p2), %v1245_v1  ;;  %v1248_v4 = vld [vmem:[%s1632_s1 + $0x14] ss:$8 sps:$4 sm:$0xff] (!%p241_p2)   ;;  %v1250_v5 = vld [vmem:[%s1632_s1 + $0x10] ss:$8 sps:$4 sm:$0xff] (!%p241_p2)  }
   0x9   : > { %403 = vmatpush1.bf16.msra.mxu0 (!%p241_p2), %v1247_v2  ;;  %v1259_v6 = vld [vmem:[%s1634_s3 + $0x40] sm:$0xff] (!%p241_p2)   ;;  %v1261_v8 = vld [vmem:[%s1634_s3 + $0x48] sm:$0xff] (!%p241_p2)   ;;  %vm377_vm0 = vcmask (!%p241_p2), 261120   ;;  %v1263_v12 = vld [vmem:[%s1634_s3 + $0x50] sm:$0xff] (!%p241_p2)   ;;  %v308_v31 = vshrl.u32 (!%p241_p2), %v307_v30, 7  ;;  %vm1033_vm1 = vcmask (!%p241_p2), 7168  }
   0xa   : > { %404 = vmatprep.subr.bf16.mxu0 (!%p241_p2), %v1248_v4  ;;  %v1260_v7 = vld [vmem:[%s1634_s3] sm:$0xff] (!%p241_p2)   ;;  %1220 = vmatprep.subr.bf16.mxu1 (!%p241_p2), %v1259_v6  ;;  %v1262_v10 = vld [vmem:[%s1634_s3 + $0x8] sm:$0xff] (!%p241_p2)   ;;  %v1264_v13 = vld [vmem:[%s1634_s3 + $0x10] sm:$0xff] (!%p241_p2)  }
   0xb   : > { %1228 = vmatpush3.bf16.msra.mxu1 (!%p241_p2), %v1260_v7  ;;  %v1265_v14 = vld [vmem:[%s1634_s3 + $0x58] sm:$0xff] (!%p241_p2)   ;;  %v1267_v17 = vld [vmem:[%s1634_s3 + $0x60] sm:$0xff] (!%p241_p2)   ;;  %v1269_v24 = vld [vmem:[%s1634_s3 + $0x68] sm:$0xff] (!%p241_p2)   ;;  %v309_v32 = vsub.s32 (!%p241_p2), 0, %v308_v31  ;;  %v313_v34 = vsub.s32 (!%p241_p2), 1, %v308_v31 }
   0xc   : > { %1221 = vmatprep.subr.bf16.mxu1 (!%p241_p2), %v1261_v8  ;;  %v1266_v15 = vld [vmem:[%s1634_s3 + $0x18] sm:$0xff] (!%p241_p2)   ;;  %v1268_v18 = vld [vmem:[%s1634_s3 + $0x20] sm:$0xff] (!%p241_p2)   ;;  %v1270_v25 = vld [vmem:[%s1634_s3 + $0x28] sm:$0xff] (!%p241_p2)  }
   0xd   : > { %405 = vmatpush1.bf16.msra.mxu0 (!%p241_p2), %v1250_v5  ;;  %v1271_v26 = vld [vmem:[%s1634_s3 + $0x70] sm:$0xff] (!%p241_p2)   ;;  %v1273_v28 = vld [vmem:[%s1634_s3 + $0x78] sm:$0xff] (!%p241_p2)   ;;  %v305_v33 = vld [vmem:[%s1633_s2] sm:$0x3] (!%p241_p2) }
   0xe   : > { %1156 = vmatprep.subr.bf16.mxu0 (!%p241_p2), %v1259_v6  ;;  %v1272_v27 = vld [vmem:[%s1634_s3 + $0x30] sm:$0xff] (!%p241_p2)   ;;  %v1274_v29 = vld [vmem:[%s1634_s3 + $0x38] sm:$0xff] (!%p241_p2)   ;;  %v1494_v35 = vrot.slane (!%p241_p2), %v305_v33, %v309_v32  ;;  %v1496_v36 = vrot.slane (!%p241_p2), %v305_v33, %v313_v34 }
   0xf   : > { %s1640_s6 = smov (!%p273_p3, %s1111_s6), 31  ;;  %1229 = vmatpush3.bf16.msra.mxu1 %v1262_v10 }
  0x10   : > { %s1112_s17 = sshll.u32 %s1640_s6, 2  ;;  %1222 = vmatprep.subr.bf16.mxu1 %v1263_v12  ;;  %s1114_s11 = sshll.u32 %s1640_s6, 3 }
  0x11   : > { %s1427_s22 = scalar_lea.vmem %s1631_s0, %s1112_s17  ;;  %s1586_s14 = scalar_lea.vmem %s1638_s7, %s1114_s11 }
  0x12   : > { %v1251_v9 = vld [vmem:[%s1427_s22] sm:$0xff]   ;;  %v1252_v11 = vld [vmem:[%s1427_s22 + $0x8] sm:$0xff]   ;;  %v1253_v16 = vld [vmem:[%s1427_s22 + $0x10] sm:$0xff]  }
  0x13   : > { %1127 = vmatmul.mubr.msk.bf16.vlgmr.msra.gmra.mrb[0].mxu0 %vm377_vm0, %v1251_v9  ;;  %1230 = vmatpush3.bf16.msra.mxu1 %v1264_v13  ;;  %v1254_v19 = vld [vmem:[%s1427_s22 + $0x18] sm:$0xff]   ;;  %v1255_v20 = vld [vmem:[%s1427_s22 + $0x20] sm:$0xff]   ;;  %v1256_v21 = vld [vmem:[%s1427_s22 + $0x28] sm:$0xff]  }
  0x14   : > { %444 = vmatprep.mubr.bf16.mxu0 %v1347_v3  ;;  %1157 = vmatpush3.bf16.msra.mxu0 %v1260_v7  ;;  %v1257_v22 = vld [vmem:[%s1427_s22 + $0x30] sm:$0xff]   ;;  %v1258_v23 = vld [vmem:[%s1427_s22 + $0x38] sm:$0xff]  }
  0x15   : > { %1158 = vmatprep.subr.bf16.mxu0 %v1261_v8  ;;  %1223 = vmatprep.subr.bf16.mxu1 %v1265_v14 }
  0x17   : > { %1231 = vmatpush3.bf16.msra.mxu1 %v1266_v15 }
  0x18   : > { %1159 = vmatpush3.bf16.msra.mxu0 %v1262_v10  ;;  %1224 = vmatprep.subr.bf16.mxu1 %v1267_v17 }
  0x19   : > { %1160 = vmatprep.subr.bf16.mxu0 %v1263_v12 }
  0x1b   : > { %1128 = vmatmul.mubr.msk.bf16.gmra.mrb[4].mxu0 %vm377_vm0, %v1252_v11  ;;  %1232 = vmatpush3.bf16.msra.mxu1 %v1268_v18 }
  0x1c   : > { %454 = vmatprep.mubr.bf16.mxu0 %v1347_v3  ;;  %1161 = vmatpush3.bf16.msra.mxu0 %v1264_v13 }
  0x1d   : > { %1162 = vmatprep.subr.bf16.mxu0 %v1265_v14  ;;  %1225 = vmatprep.subr.bf16.mxu1 %v1269_v24 }
  0x1f   : > { %1233 = vmatpush3.bf16.msra.mxu1 %v1270_v25 }
  0x20   : > { %1163 = vmatpush3.bf16.msra.mxu0 %v1266_v15  ;;  %1226 = vmatprep.subr.bf16.mxu1 %v1271_v26 }
  0x21   : > { %1164 = vmatprep.subr.bf16.mxu0 %v1267_v17 }
  0x23   : > { %1129 = vmatmul.mubr.msk.bf16.gmra.mrb[8].mxu0 %vm377_vm0, %v1253_v16  ;;  %1234 = vmatpush3.bf16.msra.mxu1 %v1272_v27 }
  0x24   : > { %464 = vmatprep.mubr.bf16.mxu0 %v1347_v3  ;;  %1165 = vmatpush3.bf16.msra.mxu0 %v1268_v18 }
  0x25   : > { %1166 = vmatprep.subr.bf16.mxu0 %v1269_v24  ;;  %1227 = vmatprep.subr.bf16.mxu1 %v1273_v28 }
  0x27   : > { %1235 = vmatpush3.bf16.msra.mxu1 %v1274_v29 }
  0x28   : > { %1167 = vmatpush3.bf16.msra.mxu0 %v1270_v25 }
  0x29   : > { %1168 = vmatprep.subr.bf16.mxu0 %v1271_v26 }
  0x2b   : > { %1130 = vmatmul.mubr.msk.bf16.gmra.mrb[12].mxu0 %vm377_vm0, %v1254_v19 }
  0x2c   : > { %474 = vmatprep.mubr.bf16.mxu0 %v1347_v3  ;;  %1169 = vmatpush3.bf16.msra.mxu0 %v1272_v27 }
  0x2d   : > { %1170 = vmatprep.subr.bf16.mxu0 %v1273_v28 }
  0x30   : > { %1171 = vmatpush3.bf16.msra.mxu0 %v1274_v29 }
  0x33   : > { %1131 = vmatmul.mubr.msk.bf16.gmra.mrb[16].mxu0 %vm377_vm0, %v1255_v20 }
  0x34   : > { %484 = vmatprep.mubr.bf16.mxu0 %v1347_v3 }
  0x3b   : > { %1132 = vmatmul.mubr.msk.bf16.gmra.mrb[20].mxu0 %vm377_vm0, %v1256_v21 }
  0x3c   : > { %494 = vmatprep.mubr.bf16.mxu0 %v1347_v3 }
  0x43   : > { %1133 = vmatmul.mubr.msk.bf16.gmra.mrb[24].mxu0 %vm377_vm0, %v1257_v22 }
  0x44   : > { %504 = vmatprep.mubr.bf16.mxu0 %v1347_v3 }
  0x4b   : > { %1134 = vmatmul.mubr.msk.bf16.gmra.mrb[28].mxu0 %vm377_vm0, %v1258_v23 }
  0xe6   : > { %v436_v37 = vpop.f32.mrb[0].mxu0 }
  0xe7   : > { %v437_v38 = vadd.f32 %v436_v37, %v1494_v35  ;;  %v438_v39 = vpop.f32.mrb[1].mxu0 }
  0xe8   : > { %v439_v40 = vadd.f32 %v438_v39, %v1496_v36  ;;  %v440_v41 = vpop.f32.mrb[2].mxu0 }
  0xe9   : > { %v515_v42 = vmul.f32 0.2, %v437_v38  ;;  %v441_v43 = vadd.f32 %v440_v41, %v1494_v35  ;;  %v442_v44 = vpop.f32.mrb[3].mxu0 }
  0xea   : > { %v516_v45 = vmul.f32 0.2, %v439_v40  ;;  %v443_v46 = vadd.f32 %v442_v44, %v1496_v36 }
  0xeb   : > { %v517_v47 = vmul.f32 0.2, %v441_v43  ;;  %v547_v49 = vmax.f32 %v437_v38, %v515_v42 }
  0xec   : > { %v518_v48 = vmul.f32 0.2, %v443_v46  ;;  %v548_v51 = vmax.f32 %v439_v40, %v516_v45 }
  0xed   : > { %v549_v50 = vmax.f32 %v441_v43, %v517_v47 }
  0xee   : > { %v550_v52 = vmax.f32 %v443_v46, %v518_v48  ;;  %v446_v53 = vpop.f32.mrb[4].mxu0 }
  0xef   : > { %v579_v54 = vpack.c.bf16 %v549_v50, %v547_v49  ;;  %v447_v55 = vadd.f32 %v446_v53, %v1494_v35  ;;  %v448_v56 = vpop.f32.mrb[5].mxu0 }
  0xf0   : > { %v449_v57 = vadd.f32 %v448_v56, %v1496_v36  ;;  %v450_v58 = vpop.f32.mrb[6].mxu0  ;;  %v580_v59 = vpack.c.bf16 %v550_v52, %v548_v51 }
  0xf1   : > { %v519_v60 = vmul.f32 0.2, %v447_v55  ;;  %v451_v61 = vadd.f32 %v450_v58, %v1494_v35  ;;  %v452_v62 = vpop.f32.mrb[7].mxu0 }
  0xf2   : > { %v520_v63 = vmul.f32 0.2, %v449_v57  ;;  %v453_v0 = vadd.f32 %v452_v62, %v1496_v36  ;;  %762 = vmatprep.mubr.bf16.mxu0 %v580_v59 }
  0xf3   : > { %v521_v1 = vmul.f32 0.2, %v451_v61  ;;  %763 = vmatmul.mubr.bf16.vlgmr.msra.gmra.mrb[32].mxu0 %v579_v54  ;;  %v551_v3 = vmax.f32 %v447_v55, %v519_v60 }
  0xf4   : > { %v522_v2 = vmul.f32 0.2, %v453_v0  ;;  %v552_v6 = vmax.f32 %v449_v57, %v520_v63 }
  0xf5   : > { %v553_v4 = vmax.f32 %v451_v61, %v521_v1 }
  0xf6   : > { %v456_v5 = vpop.f32.mrb[8].mxu0  ;;  %v554_v7 = vmax.f32 %v453_v0, %v522_v2 }
  0xf7   : > { %v457_v8 = vadd.f32 %v456_v5, %v1494_v35  ;;  %v458_v9 = vpop.f32.mrb[9].mxu0  ;;  %v581_v10 = vpack.c.bf16 %v553_v4, %v551_v3 }
  0xf8   : > { %v459_v11 = vadd.f32 %v458_v9, %v1496_v36  ;;  %v460_v12 = vpop.f32.mrb[10].mxu0  ;;  %v582_v13 = vpack.c.bf16 %v554_v7, %v552_v6 }
  0xf9   : > { %v523_v14 = vmul.f32 0.2, %v457_v8  ;;  %v461_v15 = vadd.f32 %v460_v12, %v1494_v35  ;;  %v462_v16 = vpop.f32.mrb[11].mxu0 }
  0xfa   : > { %v524_v17 = vmul.f32 0.2, %v459_v11  ;;  %v463_v18 = vadd.f32 %v462_v16, %v1496_v36  ;;  %770 = vmatprep.mubr.bf16.mxu1 %v582_v13 }
  0xfb   : > { %v525_v19 = vmul.f32 0.2, %v461_v15  ;;  %771 = vmatmul.mubr.bf16.vlgmr.msra.gmra.mrb[0].mxu1 %v581_v10  ;;  %v555_v21 = vmax.f32 %v457_v8, %v523_v14 }
  0xfc   : > { %v526_v20 = vmul.f32 0.2, %v463_v18  ;;  %v556_v23 = vmax.f32 %v459_v11, %v524_v17 }
  0xfd   : > { %v557_v22 = vmax.f32 %v461_v15, %v525_v19 }
  0xfe   : > { %v558_v24 = vmax.f32 %v463_v18, %v526_v20  ;;  %v466_v25 = vpop.f32.mrb[12].mxu0 }
  0xff   : > { %v467_v26 = vadd.f32 %v466_v25, %v1494_v35  ;;  %v468_v27 = vpop.f32.mrb[13].mxu0  ;;  %v583_v28 = vpack.c.bf16 %v557_v22, %v555_v21 }
 0x100   : > { %v469_v29 = vadd.f32 %v468_v27, %v1496_v36  ;;  %v470_v30 = vpop.f32.mrb[14].mxu0  ;;  %v584_v31 = vpack.c.bf16 %v558_v24, %v556_v23 }
 0x101   : > { %v527_v32 = vmul.f32 0.2, %v467_v26  ;;  %v471_v33 = vadd.f32 %v470_v30, %v1494_v35  ;;  %v472_v34 = vpop.f32.mrb[15].mxu0 }
 0x102   : > { %v528_v37 = vmul.f32 0.2, %v469_v29  ;;  %v473_v38 = vadd.f32 %v472_v34, %v1496_v36  ;;  %778 = vmatprep.mubr.bf16.mxu1 %v584_v31 }
 0x103   : > { %v529_v39 = vmul.f32 0.2, %v471_v33  ;;  %779 = vmatmul.mubr.bf16.gmra.mrb[4].mxu1 %v583_v28  ;;  %v559_v41 = vmax.f32 %v467_v26, %v527_v32 }
 0x104   : > { %v530_v40 = vmul.f32 0.2, %v473_v38  ;;  %v560_v43 = vmax.f32 %v469_v29, %v528_v37 }
 0x105   : > { %v561_v42 = vmax.f32 %v471_v33, %v529_v39 }
 0x106   : > { %v562_v44 = vmax.f32 %v473_v38, %v530_v40  ;;  %v476_v45 = vpop.f32.mrb[16].mxu0 }
 0x107   : > { %v477_v46 = vadd.f32 %v476_v45, %v1494_v35  ;;  %v478_v47 = vpop.f32.mrb[17].mxu0  ;;  %v585_v48 = vpack.c.bf16 %v561_v42, %v559_v41 }
 0x108   : > { %v479_v49 = vadd.f32 %v478_v47, %v1496_v36  ;;  %v480_v50 = vpop.f32.mrb[18].mxu0  ;;  %v586_v51 = vpack.c.bf16 %v562_v44, %v560_v43 }
 0x109   : > { %v531_v52 = vmul.f32 0.2, %v477_v46  ;;  %v481_v53 = vadd.f32 %v480_v50, %v1494_v35  ;;  %v482_v54 = vpop.f32.mrb[19].mxu0 }
 0x10a   : > { %v532_v55 = vmul.f32 0.2, %v479_v49  ;;  %v483_v56 = vadd.f32 %v482_v54, %v1496_v36  ;;  %786 = vmatprep.mubr.bf16.mxu1 %v586_v51 }
 0x10b   : > { %v533_v57 = vmul.f32 0.2, %v481_v53  ;;  %787 = vmatmul.mubr.bf16.gmra.mrb[8].mxu1 %v585_v48  ;;  %v563_v59 = vmax.f32 %v477_v46, %v531_v52 }
 0x10c   : > { %v534_v58 = vmul.f32 0.2, %v483_v56  ;;  %v564_v61 = vmax.f32 %v479_v49, %v532_v55 }
 0x10d   : > { %v565_v60 = vmax.f32 %v481_v53, %v533_v57 }
 0x10e   : > { %v566_v62 = vmax.f32 %v483_v56, %v534_v58  ;;  %v486_v63 = vpop.f32.mrb[20].mxu0 }
 0x10f   : > { %v487_v0 = vadd.f32 %v486_v63, %v1494_v35  ;;  %v488_v1 = vpop.f32.mrb[21].mxu0  ;;  %v587_v2 = vpack.c.bf16 %v565_v60, %v563_v59 }
 0x110   : > { %v489_v3 = vadd.f32 %v488_v1, %v1496_v36  ;;  %v490_v4 = vpop.f32.mrb[22].mxu0  ;;  %v588_v5 = vpack.c.bf16 %v566_v62, %v564_v61  ;;  %v1540_v1 = vld [vmem:[%s1636_s5] ss:$0 sm:$0xff] }
 0x111   : > { %v535_v6 = vmul.f32 0.2, %v487_v0  ;;  %v491_v7 = vadd.f32 %v490_v4, %v1494_v35  ;;  %v492_v8 = vpop.f32.mrb[23].mxu0 }
 0x112   : > { %v536_v9 = vmul.f32 0.2, %v489_v3  ;;  %v493_v10 = vadd.f32 %v492_v8, %v1496_v36  ;;  %794 = vmatprep.mubr.bf16.mxu1 %v588_v5 }
 0x113   : > { %v537_v11 = vmul.f32 0.2, %v491_v7  ;;  %795 = vmatmul.mubr.bf16.gmra.mrb[12].mxu1 %v587_v2  ;;  %v567_v13 = vmax.f32 %v487_v0, %v535_v6 }
 0x114   : > { %v538_v12 = vmul.f32 0.2, %v493_v10  ;;  %v568_v15 = vmax.f32 %v489_v3, %v536_v9 }
 0x115   : > { %v569_v14 = vmax.f32 %v491_v7, %v537_v11 }
 0x116   : > { %v570_v16 = vmax.f32 %v493_v10, %v538_v12  ;;  %v496_v17 = vpop.f32.mrb[24].mxu0 }
 0x117   : > { %v497_v18 = vadd.f32 %v496_v17, %v1494_v35  ;;  %v498_v19 = vpop.f32.mrb[25].mxu0  ;;  %v589_v20 = vpack.c.bf16 %v569_v14, %v567_v13 }
 0x118   : > { %v499_v21 = vadd.f32 %v498_v19, %v1496_v36  ;;  %v500_v22 = vpop.f32.mrb[26].mxu0  ;;  %v590_v23 = vpack.c.bf16 %v570_v16, %v568_v15 }
 0x119   : > { %v539_v24 = vmul.f32 0.2, %v497_v18  ;;  %v501_v25 = vadd.f32 %v500_v22, %v1494_v35  ;;  %v502_v26 = vpop.f32.mrb[27].mxu0 }
 0x11a   : > { %v540_v27 = vmul.f32 0.2, %v499_v21  ;;  %v503_v28 = vadd.f32 %v502_v26, %v1496_v36  ;;  %802 = vmatprep.mubr.bf16.mxu1 %v590_v23 }
 0x11b   : > { %v541_v29 = vmul.f32 0.2, %v501_v25  ;;  %803 = vmatmul.mubr.bf16.gmra.mrb[16].mxu1 %v589_v20  ;;  %v571_v31 = vmax.f32 %v497_v18, %v539_v24 }
 0x11c   : > { %v542_v30 = vmul.f32 0.2, %v503_v28  ;;  %v572_v33 = vmax.f32 %v499_v21, %v540_v27 }
 0x11d   : > { %v573_v32 = vmax.f32 %v501_v25, %v541_v29 }
 0x11e   : > { %v574_v34 = vmax.f32 %v503_v28, %v542_v30  ;;  %v506_v37 = vpop.f32.mrb[28].mxu0 }
 0x11f   : > { %v507_v38 = vadd.f32 %v506_v37, %v1494_v35  ;;  %v508_v39 = vpop.f32.mrb[29].mxu0  ;;  %v591_v40 = vpack.c.bf16 %v573_v32, %v571_v31 }
 0x120   : > { %v509_v41 = vadd.f32 %v508_v39, %v1496_v36  ;;  %v510_v42 = vpop.f32.mrb[30].mxu0  ;;  %v592_v43 = vpack.c.bf16 %v574_v34, %v572_v33 }
 0x121   : > { %v543_v44 = vmul.f32 0.2, %v507_v38  ;;  %v511_v45 = vadd.f32 %v510_v42, %v1494_v35  ;;  %v512_v46 = vpop.f32.mrb[31].mxu0  ;;  %v1533_v35 = vld [vmem:[%s1635_s4] ss:$0 sm:$0xff] }
 0x122   : > { %v544_v47 = vmul.f32 0.2, %v509_v41  ;;  %v513_v48 = vadd.f32 %v512_v46, %v1496_v36  ;;  %810 = vmatprep.mubr.bf16.mxu1 %v592_v43 }
 0x123   : > { %v545_v49 = vmul.f32 0.2, %v511_v45  ;;  %811 = vmatmul.mubr.bf16.gmra.mrb[20].mxu1 %v591_v40  ;;  %v575_v51 = vmax.f32 %v507_v38, %v543_v44 }
 0x124   : > { %v546_v50 = vmul.f32 0.2, %v513_v48  ;;  %v576_v53 = vmax.f32 %v509_v41, %v544_v47 }
 0x125   : > { %v577_v52 = vmax.f32 %v511_v45, %v545_v49 }
 0x126   : > { %v578_v54 = vmax.f32 %v513_v48, %v546_v50 }
 0x127   : > { %v593_v55 = vpack.c.bf16 %v577_v52, %v575_v51 }
 0x128   : > { %v594_v56 = vpack.c.bf16 %v578_v54, %v576_v53 }
 0x12a   : > { %818 = vmatprep.mubr.bf16.mxu1 %v594_v56 }
 0x12b   : > { %819 = vmatmul.mubr.bf16.gmra.mrb[24].mxu1 %v593_v55 }
 0x1c6   : > { %v1172_v57 = vpop.f32.mrb[32].mxu0 }
 0x1c7   : > { %v1173_v58 = vpop.f32.mrb[33].mxu0 }
 0x1c8   : > { %v1174_v36 = vadd.f32 %v1173_v58, %v1172_v57  ;;  %v1175_v59 = vpop.f32.mrb[34].mxu0 }
 0x1c9   : > { %v1176_v60 = vpop.f32.mrb[35].mxu0 }
 0x1ca   : > { %v765_v61 = vadd.f32 %v1174_v36, %v1533_v35  ;;  %v1177_v62 = vadd.f32 %v1176_v60, %v1175_v59 }
 0x1cc   : > { %v768_v63 = vadd.f32 %v1177_v62, %v1533_v35  ;;  %v827_v0 = vmul.f32 0.2, %v765_v61 }
 0x1ce   : > { %v828_v2 = vmul.f32 0.2, %v768_v63  ;;  %v1178_v3 = vpop.f32.mrb[0].mxu1  ;;  %v843_v4 = vmax.f32 %v765_v61, %v827_v0 }
 0x1cf   : > { %v1179_v5 = vpop.f32.mrb[1].mxu1 }
 0x1d0   : > { %v1180_v6 = vadd.f32 %v1179_v5, %v1178_v3  ;;  %v1181_v7 = vpop.f32.mrb[2].mxu1  ;;  %v866_v8 = vmul.f32 %v1540_v1, %v843_v4  ;;  %v844_v9 = vmax.f32 %v768_v63, %v828_v2 }
 0x1d1   : > { %v1182_v10 = vpop.f32.mrb[3].mxu1 }
 0x1d2   : > { %v773_v11 = vadd.f32 %v1180_v6, %v1533_v35  ;;  %v1183_v12 = vadd.f32 %v1182_v10, %v1181_v7  ;;  %882 = vadd.xlane.f32.xlu0 %v866_v8  ;;  %v867_v14 = vmul.f32 %v1540_v1, %v844_v9 }
 0x1d4   : > { %v776_v13 = vadd.f32 %v1183_v12, %v1533_v35  ;;  %v829_v15 = vmul.f32 0.2, %v773_v11 }
 0x1d6   : > { %v830_v16 = vmul.f32 0.2, %v776_v13  ;;  %v1184_v17 = vpop.f32.mrb[4].mxu1  ;;  %884 = vadd.xlane.f32.xlu0 %v867_v14  ;;  %v845_v18 = vmax.f32 %v773_v11, %v829_v15 }
 0x1d7   : > { %v1185_v19 = vpop.f32.mrb[5].mxu1 }
 0x1d8   : > { %v1186_v20 = vadd.f32 %v1185_v19, %v1184_v17  ;;  %v1187_v21 = vpop.f32.mrb[6].mxu1  ;;  %v868_v22 = vmul.f32 %v1540_v1, %v845_v18  ;;  %v846_v23 = vmax.f32 %v776_v13, %v830_v16 }
 0x1d9   : > { %v1188_v24 = vpop.f32.mrb[7].mxu1 }
 0x1da   : > { %v781_v25 = vadd.f32 %v1186_v20, %v1533_v35  ;;  %v1189_v26 = vadd.f32 %v1188_v24, %v1187_v21  ;;  %886 = vadd.xlane.f32.xlu1 %v868_v22  ;;  %v869_v29 = vmul.f32 %v1540_v1, %v846_v23 }
 0x1dc   : > { %v831_v27 = vmul.f32 0.2, %v781_v25  ;;  %v784_v28 = vadd.f32 %v1189_v26, %v1533_v35 }
 0x1de   : > { %v832_v30 = vmul.f32 0.2, %v784_v28  ;;  %v1190_v31 = vpop.f32.mrb[8].mxu1  ;;  %888 = vadd.xlane.f32.xlu1 %v869_v29  ;;  %v847_v32 = vmax.f32 %v781_v25, %v831_v27 }
 0x1df   : > { %v1191_v33 = vpop.f32.mrb[9].mxu1 }
 0x1e0   : > { %v1192_v34 = vadd.f32 %v1191_v33, %v1190_v31  ;;  %v1193_v37 = vpop.f32.mrb[10].mxu1  ;;  %v870_v38 = vmul.f32 %v1540_v1, %v847_v32  ;;  %v848_v39 = vmax.f32 %v784_v28, %v832_v30 }
 0x1e1   : > { %v1194_v40 = vpop.f32.mrb[11].mxu1 }
 0x1e2   : > { %v789_v41 = vadd.f32 %v1192_v34, %v1533_v35  ;;  %v1195_v42 = vadd.f32 %v1194_v40, %v1193_v37  ;;  %890 = vadd.xlane.f32.xlu0 %v870_v38  ;;  %v871_v43 = vmul.f32 %v1540_v1, %v848_v39 }
 0x1e4   : > { %v833_v44 = vmul.f32 0.2, %v789_v41  ;;  %v792_v45 = vadd.f32 %v1195_v42, %v1533_v35  ;;  %892 = vadd.xlane.f32.xlu1 %v871_v43 }
 0x1e6   : > { %v834_v46 = vmul.f32 0.2, %v792_v45  ;;  %v1196_v47 = vpop.f32.mrb[12].mxu1  ;;  %v849_v48 = vmax.f32 %v789_v41, %v833_v44 }
 0x1e7   : > { %v1197_v49 = vpop.f32.mrb[13].mxu1 }
 0x1e8   : > { %v1198_v50 = vadd.f32 %v1197_v49, %v1196_v47  ;;  %v1199_v51 = vpop.f32.mrb[14].mxu1  ;;  %v872_v52 = vmul.f32 %v1540_v1, %v849_v48  ;;  %v850_v53 = vmax.f32 %v792_v45, %v834_v46  ;;  %v1572_v45 = vld [vmem:[#allocation2] ss:$0 sm:$0xff] }
 0x1e9   : > { %v1200_v54 = vpop.f32.mrb[15].mxu1 }
 0x1ea   : > { %v797_v55 = vadd.f32 %v1198_v50, %v1533_v35  ;;  %v1201_v56 = vadd.f32 %v1200_v54, %v1199_v51  ;;  %894 = vadd.xlane.f32.xlu0 %v872_v52  ;;  %v873_v57 = vmul.f32 %v1540_v1, %v850_v53 }
 0x1ec   : > { %v835_v58 = vmul.f32 0.2, %v797_v55  ;;  %v800_v36 = vadd.f32 %v1201_v56, %v1533_v35  ;;  %896 = vadd.xlane.f32.xlu1 %v873_v57 }
 0x1ee   : > { %v836_v59 = vmul.f32 0.2, %v800_v36  ;;  %v1202_v60 = vpop.f32.mrb[16].mxu1  ;;  %v851_v61 = vmax.f32 %v797_v55, %v835_v58 }
 0x1ef   : > { %v1203_v62 = vpop.f32.mrb[17].mxu1 }
 0x1f0   : > { %v1204_v63 = vadd.f32 %v1203_v62, %v1202_v60  ;;  %v1205_v0 = vpop.f32.mrb[18].mxu1  ;;  %v874_v2 = vmul.f32 %v1540_v1, %v851_v61  ;;  %v852_v3 = vmax.f32 %v800_v36, %v836_v59 }
 0x1f1   : > { %v1206_v4 = vpop.f32.mrb[19].mxu1 }
 0x1f2   : > { %v805_v5 = vadd.f32 %v1204_v63, %v1533_v35  ;;  %v1207_v6 = vadd.f32 %v1206_v4, %v1205_v0  ;;  %898 = vadd.xlane.f32.xlu0 %v874_v2  ;;  %v875_v7 = vmul.f32 %v1540_v1, %v852_v3 }
 0x1f4   : > { %v837_v8 = vmul.f32 0.2, %v805_v5  ;;  %v808_v9 = vadd.f32 %v1207_v6, %v1533_v35  ;;  %900 = vadd.xlane.f32.xlu1 %v875_v7 }
 0x1f6   : > { %v838_v10 = vmul.f32 0.2, %v808_v9  ;;  %v1208_v11 = vpop.f32.mrb[20].mxu1  ;;  %v853_v12 = vmax.f32 %v805_v5, %v837_v8 }
 0x1f7   : > { %v1209_v13 = vpop.f32.mrb[21].mxu1 }
 0x1f8   : > { %v1210_v14 = vadd.f32 %v1209_v13, %v1208_v11  ;;  %v1211_v15 = vpop.f32.mrb[22].mxu1  ;;  %v876_v16 = vmul.f32 %v1540_v1, %v853_v12  ;;  %v854_v17 = vmax.f32 %v808_v9, %v838_v10 }
 0x1f9   : > { %v1212_v18 = vpop.f32.mrb[23].mxu1 }
 0x1fa   : > { %v813_v19 = vadd.f32 %v1210_v14, %v1533_v35  ;;  %v1213_v20 = vadd.f32 %v1212_v18, %v1211_v15  ;;  %902 = vadd.xlane.f32.xlu0 %v876_v16  ;;  %v877_v21 = vmul.f32 %v1540_v1, %v854_v17 }
 0x1fc   : > { %v839_v22 = vmul.f32 0.2, %v813_v19  ;;  %v816_v23 = vadd.f32 %v1213_v20, %v1533_v35  ;;  %904 = vadd.xlane.f32.xlu1 %v877_v21 }
 0x1fe   : > { %v840_v24 = vmul.f32 0.2, %v816_v23  ;;  %v1214_v25 = vpop.f32.mrb[24].mxu1  ;;  %v855_v26 = vmax.f32 %v813_v19, %v839_v22 }
 0x1ff   : > { %v1215_v27 = vpop.f32.mrb[25].mxu1 }
 0x200   : > { %v1216_v28 = vadd.f32 %v1215_v27, %v1214_v25  ;;  %v1217_v29 = vpop.f32.mrb[26].mxu1  ;;  %v878_v30 = vmul.f32 %v1540_v1, %v855_v26  ;;  %v856_v31 = vmax.f32 %v816_v23, %v840_v24 }
 0x201   : > { %v1218_v32 = vpop.f32.mrb[27].mxu1 }
 0x202   : > { %v821_v33 = vadd.f32 %v1216_v28, %v1533_v35  ;;  %v1219_v34 = vadd.f32 %v1218_v32, %v1217_v29  ;;  %906 = vadd.xlane.f32.xlu0 %v878_v30  ;;  %v879_v37 = vmul.f32 %v1540_v1, %v856_v31 }
 0x204   : > { %v841_v38 = vmul.f32 0.2, %v821_v33  ;;  %v824_v39 = vadd.f32 %v1219_v34, %v1533_v35  ;;  %908 = vadd.xlane.f32.xlu1 %v879_v37 }
 0x206   : > { %v842_v40 = vmul.f32 0.2, %v824_v39  ;;  %v857_v41 = vmax.f32 %v821_v33, %v841_v38 }
 0x208   : > { %v880_v42 = vmul.f32 %v1540_v1, %v857_v41  ;;  %v858_v43 = vmax.f32 %v824_v39, %v842_v40 }
 0x20a   : > { %910 = vadd.xlane.f32.xlu0 %v880_v42  ;;  %v881_v44 = vmul.f32 %v1540_v1, %v858_v43 }
 0x20c   : > { %912 = vadd.xlane.f32.xlu1 %v881_v44 }
 0x25f   : > { %v883_v46 = vpop.xlane.xlu0 %882 }
 0x260   : > { %v921_v47 = vadd.f32 %v1572_v45, %v883_v46 }
 0x262   : > { %v937_v48 = vsub.f32 0.0, %v921_v47 }
 0x263   : > { %v885_v49 = vpop.xlane.xlu0 %884 }
 0x264   : > { %v953_v50 = vmul.f32 1.442695, %v937_v48  ;;  %v922_v35 = vadd.f32 %v1572_v45, %v885_v49 }
 0x266   : > { %1275 = vpow2.f32 %v953_v50  ;;  %v938_v51 = vsub.f32 0.0, %v922_v35 }
 0x267   : > { %v887_v52 = vpop.xlane.xlu1 %886 }
 0x268   : > { %v955_v53 = vmul.f32 1.442695, %v938_v51  ;;  %v923_v54 = vadd.f32 %v1572_v45, %v887_v52 }
 0x26a   : > { %1277 = vpow2.f32 %v955_v53  ;;  %v939_v55 = vsub.f32 0.0, %v923_v54 }
 0x26b   : > { %v889_v1 = vpop.xlane.xlu1 %888 }
 0x26c   : > { %v957_v56 = vmul.f32 1.442695, %v939_v55  ;;  %v924_v57 = vadd.f32 %v1572_v45, %v889_v1 }
 0x26e   : > { %1279 = vpow2.f32 %v957_v56  ;;  %v940_v58 = vsub.f32 0.0, %v924_v57 }
 0x26f   : > { %v891_v36 = vpop.xlane.xlu0 %890 }
 0x270   : > { %v1276_v59 = vpop.eup %1275  ;;  %v959_v60 = vmul.f32 1.442695, %v940_v58  ;;  %v925_v61 = vadd.f32 %v1572_v45, %v891_v36 }
 0x271   : > { %v985_v62 = vadd.f32 1.0, %v1276_v59  ;;  %v893_v63 = vpop.xlane.xlu1 %892 }
 0x272   : > { %1281 = vpow2.f32 %v959_v60  ;;  %v941_v0 = vsub.f32 0.0, %v925_v61  ;;  %v926_v2 = vadd.f32 %v1572_v45, %v893_v63 }
 0x273   : > { %1283 = vrcp.f32 %v985_v62 }
 0x274   : > { %v1278_v3 = vpop.eup %1277  ;;  %v961_v4 = vmul.f32 1.442695, %v941_v0  ;;  %v942_v5 = vsub.f32 0.0, %v926_v2 }
 0x275   : > { %v986_v6 = vadd.f32 1.0, %v1278_v3 }
 0x276   : > { %1285 = vpow2.f32 %v961_v4  ;;  %v963_v7 = vmul.f32 1.442695, %v942_v5 }
 0x277   : > { %1287 = vrcp.f32 %v986_v6  ;;  %v895_v8 = vpop.xlane.xlu0 %894 }
 0x278   : > { %v1280_v9 = vpop.eup %1279  ;;  %1289 = vpow2.f32 %v963_v7  ;;  %v927_v10 = vadd.f32 %v1572_v45, %v895_v8 }
 0x279   : > { %v987_v11 = vadd.f32 1.0, %v1280_v9  ;;  %v897_v12 = vpop.xlane.xlu1 %896 }
 0x27a   : > { %v943_v13 = vsub.f32 0.0, %v927_v10  ;;  %v928_v14 = vadd.f32 %v1572_v45, %v897_v12 }
 0x27b   : > { %1291 = vrcp.f32 %v987_v11 }
 0x27c   : > { %v1282_v15 = vpop.eup %1281  ;;  %v965_v16 = vmul.f32 1.442695, %v943_v13  ;;  %v944_v17 = vsub.f32 0.0, %v928_v14 }
 0x27d   : > { %v1284_v18 = vpop.eup %1283  ;;  %v988_v19 = vadd.f32 1.0, %v1282_v15 }
 0x27e   : > { %1034 = vst.msk [vmem:[%s1586_s14] sm:$0xff] %vm1033_vm1, %v1284_v18  ;;  %1293 = vpow2.f32 %v965_v16  ;;  %v967_v20 = vmul.f32 1.442695, %v944_v17 }
 0x27f   : > { %1295 = vrcp.f32 %v988_v19  ;;  %v899_v21 = vpop.xlane.xlu0 %898 }
 0x280   : > { %v1286_v22 = vpop.eup %1285  ;;  %1297 = vpow2.f32 %v967_v20  ;;  %v929_v23 = vadd.f32 %v1572_v45, %v899_v21 }
 0x281   : > { %v1288_v24 = vpop.eup %1287  ;;  %v989_v25 = vadd.f32 1.0, %v1286_v22  ;;  %v901_v26 = vpop.xlane.xlu1 %900 }
 0x282   : > { %v1290_v27 = vpop.eup %1289  ;;  %1035 = vst.msk [vmem:[%s1586_s14 + $0x8] sm:$0xff] %vm1033_vm1, %v1288_v24  ;;  %v945_v28 = vsub.f32 0.0, %v929_v23  ;;  %v930_v29 = vadd.f32 %v1572_v45, %v901_v26 }
 0x283   : > { %1299 = vrcp.f32 %v989_v25  ;;  %v990_v30 = vadd.f32 1.0, %v1290_v27 }
 0x284   : > { %v969_v31 = vmul.f32 1.442695, %v945_v28  ;;  %v946_v32 = vsub.f32 0.0, %v930_v29 }
 0x285   : > { %v1292_v33 = vpop.eup %1291  ;;  %1301 = vrcp.f32 %v990_v30 }
 0x286   : > { %1036 = vst.msk [vmem:[%s1586_s14 + $0x10] sm:$0xff] %vm1033_vm1, %v1292_v33  ;;  %1303 = vpow2.f32 %v969_v31  ;;  %v971_v34 = vmul.f32 1.442695, %v946_v32 }
 0x287   : > { %v903_v37 = vpop.xlane.xlu0 %902 }
 0x288   : > { %v1294_v38 = vpop.eup %1293  ;;  %1305 = vpow2.f32 %v971_v34  ;;  %v931_v39 = vadd.f32 %v1572_v45, %v903_v37 }
 0x289   : > { %v1296_v40 = vpop.eup %1295  ;;  %v991_v41 = vadd.f32 1.0, %v1294_v38  ;;  %v905_v42 = vpop.xlane.xlu1 %904 }
 0x28a   : > { %v1298_v43 = vpop.eup %1297  ;;  %1037 = vst.msk [vmem:[%s1586_s14 + $0x18] sm:$0xff] %vm1033_vm1, %v1296_v40  ;;  %v947_v44 = vsub.f32 0.0, %v931_v39  ;;  %v932_v46 = vadd.f32 %v1572_v45, %v905_v42 }
 0x28b   : > { %1307 = vrcp.f32 %v991_v41  ;;  %v992_v47 = vadd.f32 1.0, %v1298_v43 }
 0x28c   : > { %v973_v48 = vmul.f32 1.442695, %v947_v44  ;;  %v948_v49 = vsub.f32 0.0, %v932_v46 }
 0x28d   : > { %v1300_v50 = vpop.eup %1299  ;;  %1309 = vrcp.f32 %v992_v47 }
 0x28e   : > { %1038 = vst.msk [vmem:[%s1586_s14 + $0x20] sm:$0xff] %vm1033_vm1, %v1300_v50  ;;  %1311 = vpow2.f32 %v973_v48  ;;  %v975_v35 = vmul.f32 1.442695, %v948_v49 }
 0x28f   : > { %v1302_v51 = vpop.eup %1301  ;;  %v907_v52 = vpop.xlane.xlu0 %906 }
 0x290   : > { %v1304_v53 = vpop.eup %1303  ;;  %1039 = vst.msk [vmem:[%s1586_s14 + $0x28] sm:$0xff] %vm1033_vm1, %v1302_v51  ;;  %1313 = vpow2.f32 %v975_v35  ;;  %v933_v54 = vadd.f32 %v1572_v45, %v907_v52 }
 0x291   : > { %v993_v55 = vadd.f32 1.0, %v1304_v53  ;;  %v909_v1 = vpop.xlane.xlu1 %908 }
 0x292   : > { %v1306_v56 = vpop.eup %1305  ;;  %v949_v57 = vsub.f32 0.0, %v933_v54  ;;  %v934_v58 = vadd.f32 %v1572_v45, %v909_v1 }
 0x293   : > { %1315 = vrcp.f32 %v993_v55  ;;  %v994_v36 = vadd.f32 1.0, %v1306_v56 }
 0x294   : > { %v977_v59 = vmul.f32 1.442695, %v949_v57  ;;  %v950_v60 = vsub.f32 0.0, %v934_v58 }
 0x295   : > { %v1308_v61 = vpop.eup %1307  ;;  %1317 = vrcp.f32 %v994_v36 }
 0x296   : > { %1040 = vst.msk [vmem:[%s1586_s14 + $0x30] sm:$0xff] %vm1033_vm1, %v1308_v61  ;;  %1319 = vpow2.f32 %v977_v59  ;;  %v979_v62 = vmul.f32 1.442695, %v950_v60 }
 0x297   : > { %v1310_v63 = vpop.eup %1309  ;;  %v911_v0 = vpop.xlane.xlu0 %910 }
 0x298   : > { %v1312_v2 = vpop.eup %1311  ;;  %1041 = vst.msk [vmem:[%s1586_s14 + $0x38] sm:$0xff] %vm1033_vm1, %v1310_v63  ;;  %1321 = vpow2.f32 %v979_v62  ;;  %v935_v3 = vadd.f32 %v1572_v45, %v911_v0 }
 0x299   : > { %v995_v4 = vadd.f32 1.0, %v1312_v2  ;;  %v913_v5 = vpop.xlane.xlu1 %912 }
 0x29a   : > { %v1314_v6 = vpop.eup %1313  ;;  %v951_v7 = vsub.f32 0.0, %v935_v3  ;;  %v936_v8 = vadd.f32 %v1572_v45, %v913_v5 }
 0x29b   : > { %1323 = vrcp.f32 %v995_v4  ;;  %v996_v9 = vadd.f32 1.0, %v1314_v6 }
 0x29c   : > { %v981_v10 = vmul.f32 1.442695, %v951_v7  ;;  %v952_v11 = vsub.f32 0.0, %v936_v8 }
 0x29d   : > { %v1316_v12 = vpop.eup %1315  ;;  %1325 = vrcp.f32 %v996_v9 }
 0x29e   : > { %1042 = vst.msk [vmem:[%s1586_s14 + $0x40] sm:$0xff] %vm1033_vm1, %v1316_v12  ;;  %1327 = vpow2.f32 %v981_v10  ;;  %v983_v13 = vmul.f32 1.442695, %v952_v11 }
 0x29f   : > { %v1318_v14 = vpop.eup %1317 }
 0x2a0   : > { %v1320_v15 = vpop.eup %1319  ;;  %1043 = vst.msk [vmem:[%s1586_s14 + $0x48] sm:$0xff] %vm1033_vm1, %v1318_v14  ;;  %1329 = vpow2.f32 %v983_v13 }
 0x2a1   : > { %v997_v16 = vadd.f32 1.0, %v1320_v15 }
 0x2a2   : > { %v1322_v45 = vpop.eup %1321 }
 0x2a3   : > { %1331 = vrcp.f32 %v997_v16  ;;  %v998_v17 = vadd.f32 1.0, %v1322_v45 }
 0x2a5   : > { %v1324_v18 = vpop.eup %1323  ;;  %1333 = vrcp.f32 %v998_v17 }
 0x2a6   : > { %1044 = vst.msk [vmem:[%s1586_s14 + $0x50] sm:$0xff] %vm1033_vm1, %v1324_v18 }
 0x2a7   : > { %v1326_v19 = vpop.eup %1325 }
 0x2a8   : > { %v1328_v20 = vpop.eup %1327  ;;  %1045 = vst.msk [vmem:[%s1586_s14 + $0x58] sm:$0xff] %vm1033_vm1, %v1326_v19 }
 0x2a9   : > { %v999_v21 = vadd.f32 1.0, %v1328_v20 }
 0x2aa   : > { %v1330_v22 = vpop.eup %1329 }
 0x2ab   : > { %1335 = vrcp.f32 %v999_v21  ;;  %v1000_v23 = vadd.f32 1.0, %v1330_v22 }
 0x2ad   : > { %v1332_v24 = vpop.eup %1331  ;;  %1337 = vrcp.f32 %v1000_v23 }
 0x2ae   : > { %1046 = vst.msk [vmem:[%s1586_s14 + $0x60] sm:$0xff] %vm1033_vm1, %v1332_v24 }
 0x2af   : > { %v1334_v25 = vpop.eup %1333 }
 0x2b0   : > { %1047 = vst.msk [vmem:[%s1586_s14 + $0x68] sm:$0xff] %vm1033_vm1, %v1334_v25 }
 0x2b5   : > { %v1336_v26 = vpop.eup %1335 }
 0x2b6   : > { %1048 = vst.msk [vmem:[%s1586_s14 + $0x70] sm:$0xff] %vm1033_vm1, %v1336_v26 }
 0x2b7   : > { %v1338_v27 = vpop.eup %1337 }
 0x2b8   : > { %1049 = vst.msk [vmem:[%s1586_s14 + $0x78] sm:$0xff] %vm1033_vm1, %v1338_v27 }
 0x2b9 PF: > { %s19_s26 = sadd.s32 1, %s1345_s26  }
 0x2ba   : > { %p16_p4 = scmp.ge.s32.totalorder %s19_s26, 4  }
 0x2bc   :  { %18 = sbr.rel (!%p16_p4) target bundleno = 3 (0x3), region = 78 }

</bundles_post_ra>
